<compile_context>
chip_gen: v5e
topology: v5e:2x2
jax: 0.10.0
libtpu: 0.0.40
codegen_flags: <defaults>
</compile_context>

<pallas_src>
import functools

import jax
import jax.numpy as jnp
from jax.experimental import pallas as pl
from jax.experimental.pallas import tpu as pltpu


def critic_kernel(xt_ref, w1t_ref, b1t_ref, w2t_ref, b2t_ref, w3t_ref, b3_ref, o_ref):
    # Feature-major: columns are batch elements, so every matmul has a wide
    # MXU N dimension (TB) and the final store is a lane-dense (1, TB) row.
    h1 = jnp.dot(w1t_ref[...], xt_ref[...], preferred_element_type=jnp.float32)
    h1 = jnp.maximum(h1 + b1t_ref[...], 0.0)                      # (H, TB)
    h2 = jnp.dot(w2t_ref[...], h1, preferred_element_type=jnp.float32)
    h2 = jnp.maximum(h2 + b2t_ref[...], 0.0)                      # (H, TB)
    v = jnp.dot(w3t_ref[...], h2, preferred_element_type=jnp.float32) + b3_ref[...]
    o_ref[...] = v                                                # (1, TB)


def prepare_params(params):
    """One-time layout prep (hoisted out of the per-call path):
    transpose weights/biases into the feature-major layout the kernel uses."""
    return {
        "w1t": jnp.asarray(params["w1"], jnp.float32).T,   # (H, num_state)
        "b1t": jnp.asarray(params["b1"], jnp.float32).T,   # (H, 1)
        "w2t": jnp.asarray(params["w2"], jnp.float32).T,   # (H, H)
        "b2t": jnp.asarray(params["b2"], jnp.float32).T,   # (H, 1)
        "w3t": jnp.asarray(params["w3"], jnp.float32).T,   # (1, H)
        "b3":  jnp.asarray(params["b3"], jnp.float32),     # (1, 1)
    }


def _choose_tb(batch, tb_max=1024):
    """Lane-tile size: multiple of 128, aim for >=2 grid steps (v7x megacore)
    when the batch is big enough, capped to keep intermediates small."""
    half = -(-batch // 2)                      # cdiv(batch, 2)
    tb = ((half + 127) // 128) * 128           # round up to lane multiple
    return max(128, min(tb, tb_max))


@functools.partial(jax.jit, static_argnames=("tb",))
def _critic_forward_prepared(x, prep, *, tb):
    B, num_state = x.shape

    n_tiles = pl.cdiv(B, tb)
    B_pad = n_tiles * tb

    # Feature-major input: (num_state, B_pad); padded batch columns are zeros
    # (they produce relu-of-bias garbage that is sliced off below).
    xt = x
    if B_pad != B:
        xt = jnp.pad(xt, ((0, B_pad - B), (0, 0)))
    xt = xt.T  # (num_state, B_pad)

    def const_spec(arr):
        # Same block every grid step -> fetched once, VMEM-resident.
        return pl.BlockSpec(arr.shape, lambda i: (0,) * arr.ndim)

    out = pl.pallas_call(
        critic_kernel,
        out_shape=jax.ShapeDtypeStruct((1, B_pad), jnp.float32),
        grid=(n_tiles,),
        in_specs=[
            pl.BlockSpec((num_state, tb), lambda i: (0, i)),  # x tile per step
            const_spec(prep["w1t"]), const_spec(prep["b1t"]),
            const_spec(prep["w2t"]), const_spec(prep["b2t"]),
            const_spec(prep["w3t"]), const_spec(prep["b3"]),
        ],
        out_specs=pl.BlockSpec((1, tb), lambda i: (0, i)),     # lane-dense row
        compiler_params=pltpu.CompilerParams(
            dimension_semantics=("parallel",),  # megacore sharding on v7x
        ),
    )(xt, prep["w1t"], prep["b1t"], prep["w2t"], prep["b2t"],
      prep["w3t"], prep["b3"])

    # drop batch padding, back to torch's (B, 1)
    return out[0, :B].reshape(B, 1)


def critic_forward(x, prepared_params, tb_max=1024):
    """x: (B, num_state) float32; prepared_params from prepare_params().
    Returns (B, 1) float32, matching torch Critic.forward semantics."""
    tb = _choose_tb(x.shape[0], tb_max)
    return _critic_forward_prepared(x, prepared_params, tb=tb)


def init_params(key, num_state, hidden_layer=64):
    """Deterministic init mirroring torch.nn.Linear default (uniform +-1/sqrt(fan_in))."""
    ks = jax.random.split(key, 6)

    def linear(kw, kb, fan_in, fan_out):
        bound = 1.0 / jnp.sqrt(float(fan_in))
        w = jax.random.uniform(kw, (fan_in, fan_out), jnp.float32, -bound, bound)
        b = jax.random.uniform(kb, (1, fan_out), jnp.float32, -bound, bound)
        return w, b

    w1, b1 = linear(ks[0], ks[1], num_state, hidden_layer)
    w2, b2 = linear(ks[2], ks[3], hidden_layer, hidden_layer)
    w3, b3 = linear(ks[4], ks[5], hidden_layer, 1)
    return {"w1": w1, "b1": b1, "w2": w2, "b2": b2, "w3": w3, "b3": b3}


def critic_ref(x, p):
    """Pure-JAX f32 reference (original torch semantics) for correctness check."""
    h1 = jnp.maximum(x @ p["w1"] + p["b1"], 0.0)
    h2 = jnp.maximum(h1 @ p["w2"] + p["b2"], 0.0)
    return h2 @ p["w3"] + p["b3"]


if __name__ == "__main__":
    key = jax.random.PRNGKey(0)
    kx, kp = jax.random.split(key)

    batch, num_state, hidden = 8, 16, 64
    x = jax.random.normal(kx, (batch, num_state), jnp.float32)
    params = init_params(kp, num_state, hidden)

    prep = prepare_params(params)          # one-time, hoisted out of per-call path
    value = critic_forward(x, prep)
    value = jax.block_until_ready(value)

    ref = critic_ref(x, params)
    assert value.shape == (batch, 1), f"bad shape {value.shape}"
    # all-f32 operands -> tight tolerance vs the pure-JAX reference
    assert jnp.allclose(value, ref, atol=2e-3, rtol=2e-3), "mismatch vs reference"

    print("KERNEL_OK")
</pallas_src>

<mosaic_0001>
module attributes {stable_mosaic.version = 11 : i64} {
  func.func @critic_kernel(%arg0: i32, %arg1: memref<16x128xf32, #tpu.memory_space<vmem>>, %arg2: memref<64x16xf32, #tpu.memory_space<vmem>>, %arg3: memref<64x1xf32, #tpu.memory_space<vmem>>, %arg4: memref<64x64xf32, #tpu.memory_space<vmem>>, %arg5: memref<64x1xf32, #tpu.memory_space<vmem>>, %arg6: memref<1x64xf32, #tpu.memory_space<vmem>>, %arg7: memref<1x1xf32, #tpu.memory_space<vmem>>, %arg8: memref<1x128xf32, #tpu.memory_space<vmem>>) attributes {dimension_semantics = [#tpu.dimension_semantics<parallel>], iteration_bounds = array<i64: 1>, scalar_prefetch = 0 : i64, scratch_operands = 0 : i64, tpu.core_type = #tpu.core_type<tc>, window_params = [{transform_indices = @transform_0, window_bounds = array<i64: 16, 128>}, {pipeline_mode = #tpu.pipeline_mode<synchronous>, transform_indices = @transform_1, window_bounds = array<i64: 64, 16>}, {pipeline_mode = #tpu.pipeline_mode<synchronous>, transform_indices = @transform_2, window_bounds = array<i64: 64, 1>}, {pipeline_mode = #tpu.pipeline_mode<synchronous>, transform_indices = @transform_3, window_bounds = array<i64: 64, 64>}, {pipeline_mode = #tpu.pipeline_mode<synchronous>, transform_indices = @transform_4, window_bounds = array<i64: 64, 1>}, {pipeline_mode = #tpu.pipeline_mode<synchronous>, transform_indices = @transform_5, window_bounds = array<i64: 1, 64>}, {pipeline_mode = #tpu.pipeline_mode<synchronous>, transform_indices = @transform_6, window_bounds = array<i64: 1, 1>}, {transform_indices = @transform_7, window_bounds = array<i64: 1, 128>}]} {
    %c0 = arith.constant 0 : index
    %c0_0 = arith.constant 0 : index
    %0 = vector.load %arg2[%c0, %c0_0] : memref<64x16xf32, #tpu.memory_space<vmem>>, vector<64x16xf32>
    %c0_1 = arith.constant 0 : index
    %c0_2 = arith.constant 0 : index
    %1 = vector.load %arg1[%c0_1, %c0_2] : memref<16x128xf32, #tpu.memory_space<vmem>>, vector<16x128xf32>
    %cst = arith.constant dense<0.000000e+00> : vector<64x128xf32>
    %2 = tpu.matmul %0, %1, %cst {dimension_numbers = #tpu.dot_dimension_numbers<[1], [0], [0], [1], [0, 0, 1, 1], [], []>} : vector<64x16xf32>, vector<16x128xf32>, vector<64x128xf32> -> vector<64x128xf32>
    %c0_3 = arith.constant 0 : index
    %c0_4 = arith.constant 0 : index
    %3 = vector.load %arg3[%c0_3, %c0_4] : memref<64x1xf32, #tpu.memory_space<vmem>>, vector<64x1xf32>
    %4 = vector.broadcast %3 : vector<64x1xf32> to vector<64x128xf32>
    %5 = arith.addf %2, %4 : vector<64x128xf32>
    %cst_5 = arith.constant 0.000000e+00 : f32
    %6 = vector.broadcast %cst_5 : f32 to vector<64x128xf32>
    %7 = arith.maximumf %5, %6 : vector<64x128xf32>
    %c0_6 = arith.constant 0 : index
    %c0_7 = arith.constant 0 : index
    %8 = vector.load %arg4[%c0_6, %c0_7] : memref<64x64xf32, #tpu.memory_space<vmem>>, vector<64x64xf32>
    %cst_8 = arith.constant dense<0.000000e+00> : vector<64x128xf32>
    %9 = tpu.matmul %8, %7, %cst_8 {dimension_numbers = #tpu.dot_dimension_numbers<[1], [0], [0], [1], [0, 0, 1, 1], [], []>} : vector<64x64xf32>, vector<64x128xf32>, vector<64x128xf32> -> vector<64x128xf32>
    %c0_9 = arith.constant 0 : index
    %c0_10 = arith.constant 0 : index
    %10 = vector.load %arg5[%c0_9, %c0_10] : memref<64x1xf32, #tpu.memory_space<vmem>>, vector<64x1xf32>
    %11 = vector.broadcast %10 : vector<64x1xf32> to vector<64x128xf32>
    %12 = arith.addf %9, %11 : vector<64x128xf32>
    %cst_11 = arith.constant 0.000000e+00 : f32
    %13 = vector.broadcast %cst_11 : f32 to vector<64x128xf32>
    %14 = arith.maximumf %12, %13 : vector<64x128xf32>
    %c0_12 = arith.constant 0 : index
    %c0_13 = arith.constant 0 : index
    %15 = vector.load %arg6[%c0_12, %c0_13] : memref<1x64xf32, #tpu.memory_space<vmem>>, vector<1x64xf32>
    %cst_14 = arith.constant dense<0.000000e+00> : vector<1x128xf32>
    %16 = tpu.matmul %15, %14, %cst_14 {dimension_numbers = #tpu.dot_dimension_numbers<[1], [0], [0], [1], [0, 0, 1, 1], [], []>} : vector<1x64xf32>, vector<64x128xf32>, vector<1x128xf32> -> vector<1x128xf32>
    %c0_15 = arith.constant 0 : index
    %c0_16 = arith.constant 0 : index
    %17 = vector.load %arg7[%c0_15, %c0_16] : memref<1x1xf32, #tpu.memory_space<vmem>>, vector<1x1xf32>
    %18 = vector.broadcast %17 : vector<1x1xf32> to vector<1x128xf32>
    %19 = arith.addf %16, %18 : vector<1x128xf32>
    %c0_17 = arith.constant 0 : index
    %c0_18 = arith.constant 0 : index
    %20 = vector.load %arg8[%c0_17, %c0_18] : memref<1x128xf32, #tpu.memory_space<vmem>>, vector<1x128xf32>
    tpu.vector_store %arg8[%c0_17, %c0_18], %19 {strides = array<i32>} : memref<1x128xf32, #tpu.memory_space<vmem>>, vector<1x128xf32>,
    return
  }
  func.func @transform_0(%arg0: i32) -> (i32, i32) {
    %c0_i32 = arith.constant 0 : i32
    %c0_i32_0 = arith.constant 0 : i32
    return %c0_i32, %arg0 : i32, i32
  }
  func.func @transform_1(%arg0: i32) -> (i32, i32) {
    %c0_i32 = arith.constant 0 : i32
    %c0_i32_0 = arith.constant 0 : i32
    %c0_i32_1 = arith.constant 0 : i32
    return %c0_i32, %c0_i32_0 : i32, i32
  }
  func.func @transform_2(%arg0: i32) -> (i32, i32) {
    %c0_i32 = arith.constant 0 : i32
    %c0_i32_0 = arith.constant 0 : i32
    %c0_i32_1 = arith.constant 0 : i32
    return %c0_i32, %c0_i32_0 : i32, i32
  }
  func.func @transform_3(%arg0: i32) -> (i32, i32) {
    %c0_i32 = arith.constant 0 : i32
    %c0_i32_0 = arith.constant 0 : i32
    %c0_i32_1 = arith.constant 0 : i32
    return %c0_i32, %c0_i32_0 : i32, i32
  }
  func.func @transform_4(%arg0: i32) -> (i32, i32) {
    %c0_i32 = arith.constant 0 : i32
    %c0_i32_0 = arith.constant 0 : i32
    %c0_i32_1 = arith.constant 0 : i32
    return %c0_i32, %c0_i32_0 : i32, i32
  }
  func.func @transform_5(%arg0: i32) -> (i32, i32) {
    %c0_i32 = arith.constant 0 : i32
    %c0_i32_0 = arith.constant 0 : i32
    %c0_i32_1 = arith.constant 0 : i32
    return %c0_i32, %c0_i32_0 : i32, i32
  }
  func.func @transform_6(%arg0: i32) -> (i32, i32) {
    %c0_i32 = arith.constant 0 : i32
    %c0_i32_0 = arith.constant 0 : i32
    %c0_i32_1 = arith.constant 0 : i32
    return %c0_i32, %c0_i32_0 : i32, i32
  }
  func.func @transform_7(%arg0: i32) -> (i32, i32) {
    %c0_i32 = arith.constant 0 : i32
    %c0_i32_0 = arith.constant 0 : i32
    return %c0_i32, %arg0 : i32, i32
  }
}

</mosaic_0001>

<bundles_post_ra>
// kernel: _critic_forward_prepared.1
= control target key start
LH: loop header
LB: loop body
LE: loop exit
PB: predicated region body
PF: predicated region fallthrough
CT: control target
= control target key end

     0   :  { %v357_v0 = vmov 0   ;;  %vm86_vm0 = vcmask 130048   ;;  %vm216_vm1 = vcmask 523264   ;;  %s526_s2 = inlined_call_operand.vmem [shape: f32[64,1], index: 2, kind: input, shape index: {}]   ;;  %s527_s0 = inlined_call_operand.vmem [shape: f32[16,128], index: 0, kind: input, shape index: {}]   ;;  %s528_s1 = inlined_call_operand.vmem [shape: f32[64,16], index: 1, kind: input, shape index: {}]   ;;  %s529_s6 = inlined_call_operand.<no memory space> [shape: f32[1,1], index: 6, kind: input, shape index: {}]   ;;  %s530_s4 = inlined_call_operand.vmem [shape: f32[64,1], index: 4, kind: input, shape index: {}]   ;;  %s531_s3 = inlined_call_operand.vmem [shape: f32[64,64], index: 3, kind: input, shape index: {}]   ;;  %s532_s5 = inlined_call_operand.vmem [shape: f32[1,64], index: 5, kind: input, shape index: {}]   ;;  %s533_s7 = inlined_call_operand.vmem [shape: f32[1,128], index: 7, kind: output, shape index: {}]  }
   0x1   :  { %355 = vset.pattern.permute.xlu1 %v357_v0  ;;  %354 = vset.pattern.permute.xlu0 %v357_v0  ;;  %v45_v1 = vld [vmem:[%s526_s2 + $0x38] sm:$0xff]  ;;  %v43_v2 = vld [vmem:[%s526_s2 + $0x28] sm:$0xff]  ;;  %v36_v4 = vld [vmem:[%s527_s0] sm:$0xff]  ;;  %v12_v5 = vstv %s529_s6 }
   0x2   :  { %v37_v3 = vld [vmem:[%s527_s0 + $0x8] sm:$0xff]  ;;  %83 = vperm.xlu0 %354, %v45_v1   ;;  %73 = vperm.xlu1 %355, %v43_v2   ;;  %v28_v6 = vld [vmem:[%s528_s1] sm:$0xff]  ;;  %13 = vst [vmem:[#allocation2] sm:$0x1] %v12_v5  ;;  %v44_v8 = vld [vmem:[%s526_s2 + $0x30] sm:$0xff] }
   0x3   :  { %125 = vmatpush.msra.mxu0 %v37_v3  ;;  %343 = vmatpush.msra.mxu2 %v37_v3  ;;  %v33_v7 = vld [vmem:[%s528_s1 + $0x28] sm:$0xff]  ;;  %v42_v9 = vld [vmem:[%s526_s2 + $0x20] sm:$0xff]  ;;  %v41_v10 = vld [vmem:[%s526_s2 + $0x18] sm:$0xff] }
   0x4   :  { %356 = vset.pattern.permute.xlu2 %v357_v0  ;;  %v29_v11 = vld [vmem:[%s528_s1 + $0x8] sm:$0xff]  ;;  %v34_v12 = vld [vmem:[%s528_s1 + $0x30] sm:$0xff]  ;;  %v38_v15 = vld [vmem:[%s526_s2] sm:$0xff] }
   0x5   :  { %126 = vmatpush.msra.mxu0 %v36_v4  ;;  %344 = vmatpush.msra.mxu2 %v36_v4  ;;  %v40_v13 = vld [vmem:[%s526_s2 + $0x10] sm:$0xff]  ;;  %v39_v14 = vld [vmem:[%s526_s2 + $0x8] sm:$0xff]  ;;  %v35_v17 = vld [vmem:[%s528_s1 + $0x38] sm:$0xff] }
   0x6   :  { %326 = vmatmul.msk.f32.vlgmr.msra.gmra.mxu0 %vm86_vm0, %v28_v6  ;;  %331 = vmatmul.msk.f32.vlgmr.msra.gmra.mxu2 %vm86_vm0, %v33_v7  ;;  %v30_v16 = vld [vmem:[%s528_s1 + $0x10] sm:$0xff]  ;;  %v175_v18 = vld [vmem:[%s530_s4 + $0x38] sm:$0xff]  ;;  %v173_v20 = vld [vmem:[%s530_s4 + $0x28] sm:$0xff] }
   0x7   :  { %63 = vperm.xlu2 %356, %v41_v10   ;;  %v174_v19 = vld [vmem:[%s530_s4 + $0x30] sm:$0xff]  ;;  %v31_v21 = vld [vmem:[%s528_s1 + $0x18] sm:$0xff]  ;;  %v172_v22 = vld [vmem:[%s530_s4 + $0x20] sm:$0xff] }
   0x8   :  { %v171_v23 = vld [vmem:[%s530_s4 + $0x18] sm:$0xff]  ;;  %v170_v24 = vld [vmem:[%s530_s4 + $0x10] sm:$0xff]  ;;  %v32_v25 = vld [vmem:[%s528_s1 + $0x20] sm:$0xff] }
   0x9   :  { %v169_v26 = vld [vmem:[%s530_s4 + $0x8] sm:$0xff]  ;;  %v168_v27 = vld [vmem:[%s530_s4] sm:$0xff]  ;;  %v162_v1 = vld [vmem:[%s531_s3 + $0x10] sm:$0xff] }
   0xa   :  { %78 = vperm.xlu0 %354, %v44_v8   ;;  %68 = vperm.xlu1 %355, %v42_v9   ;;  %v291_v28 = vld [vmem:[#allocation2] sm:$0x1]  ;;  %v161_v63 = vld [vmem:[%s531_s3 + $0x8] sm:$0xff]  ;;  %v166_v2 = vld [vmem:[%s531_s3 + $0x30] sm:$0xff] }
   0xb   :  { %v160_v61 = vld [vmem:[%s531_s3] sm:$0xff]  ;;  %v165_v0 = vld [vmem:[%s531_s3 + $0x28] sm:$0xff]  ;;  %v163_v3 = vld [vmem:[%s531_s3 + $0x18] sm:$0xff] }
   0xc   :  { %v164_v62 = vld [vmem:[%s531_s3 + $0x20] sm:$0xff]  ;;  %v167_v4 = vld [vmem:[%s531_s3 + $0x38] sm:$0xff] }
   0xe   :  { %327 = vmatmul.msk.f32.gmra.mxu0 %vm86_vm0, %v29_v11  ;;  %332 = vmatmul.msk.f32.gmra.mxu2 %vm86_vm0, %v34_v12 }
   0xf   :  { %58 = vperm.xlu2 %356, %v40_v13  }
  0x12   :  { %53 = vperm.xlu0 %354, %v39_v14   ;;  %48 = vperm.xlu1 %355, %v38_v15  }
  0x16   :  { %328 = vmatmul.msk.f32.gmra.mxu0 %vm86_vm0, %v30_v16  ;;  %333 = vmatmul.msk.f32.gmra.mxu2 %vm86_vm0, %v35_v17 }
  0x17   :  { %213 = vperm.xlu2 %356, %v175_v18  }
  0x1a   :  { %208 = vperm.xlu0 %354, %v174_v19   ;;  %203 = vperm.xlu1 %355, %v173_v20  }
  0x1e   :  { %329 = vmatmul.msk.f32.gmra.mxu0 %vm86_vm0, %v31_v21 }
  0x1f   :  { %198 = vperm.xlu2 %356, %v172_v22  }
  0x22   :  { %193 = vperm.xlu0 %354, %v171_v23   ;;  %188 = vperm.xlu1 %355, %v170_v24  }
  0x26   :  { %330 = vmatmul.msk.f32.gmra.mxu0 %vm86_vm0, %v32_v25 }
  0x27   :  { %183 = vperm.xlu2 %356, %v169_v26  }
  0x2a   :  { %178 = vperm.xlu0 %354, %v168_v27   ;;  %294 = vperm.xlu1 %355, %v291_v28  }
  0x61   :  { %v64_v40 = vpop.permute.xlu2 %63 }
  0x69   :  { %v59_v50 = vpop.permute.xlu2 %58 }
  0x71   :  { %v214_v9 = vpop.permute.xlu2 %213 }
  0x74   :  { %v84_v32 = vpop.permute.xlu0 %83  ;;  %v74_v34 = vpop.permute.xlu1 %73 }
  0x79   :  { %v199_v14 = vpop.permute.xlu2 %198 }
  0x7c   :  { %v79_v36 = vpop.permute.xlu0 %78  ;;  %v69_v44 = vpop.permute.xlu1 %68 }
  0x83   :  { %v128_v29 = vpop.f32.mrf.mxu0 }
  0x84   :  { %v54_v53 = vpop.permute.xlu0 %53  ;;  %v49_v54 = vpop.permute.xlu1 %48 }
  0x85   :  { %v129_v57 = vadd.f32 %v128_v29, %v49_v54  ;;  %v184_v29 = vpop.permute.xlu2 %183 }
  0x87   :  { %v152_v60 = vmax.f32 %v129_v57, 0.0 }
  0x89   :  { %v143_v30 = vpop.f32.mrf.mxu2 }
  0x8a   :  { %v144_v42 = vadd.f32 %v143_v30, %v74_v34 }
  0x8b   :  { %v131_v31 = vpop.f32.mrf.mxu0 }
  0x8c   :  { %v157_v46 = vmax.f32 %v144_v42, 0.0  ;;  %v132_v55 = vadd.f32 %v131_v31, %v54_v53  ;;  %v209_v10 = vpop.permute.xlu0 %208  ;;  %v204_v13 = vpop.permute.xlu1 %203 }
  0x8e   :  { %v153_v59 = vmax.f32 %v132_v55, 0.0 }
  0x91   :  { %v146_v33 = vpop.f32.mrf.mxu2 }
  0x92   :  { %v147_v38 = vadd.f32 %v146_v33, %v79_v36 }
  0x93   :  { %v134_v35 = vpop.f32.mrf.mxu0 }
  0x94   :  { %v158_v45 = vmax.f32 %v147_v38, 0.0  ;;  %v135_v51 = vadd.f32 %v134_v35, %v59_v50  ;;  %v194_v18 = vpop.permute.xlu0 %193  ;;  %v189_v26 = vpop.permute.xlu1 %188 }
  0x96   :  { %v154_v58 = vmax.f32 %v135_v51, 0.0 }
  0x99   :  { %v149_v37 = vpop.f32.mrf.mxu2 }
  0x9a   :  { %v150_v39 = vadd.f32 %v149_v37, %v84_v32  ;;  %v290_v37 = vld [vmem:[%s532_s5] sm:$0x1] }
  0x9b   :  { %v137_v41 = vpop.f32.mrf.mxu0 }
  0x9c   :  { %v159_v43 = vmax.f32 %v150_v39, 0.0  ;;  %v138_v48 = vadd.f32 %v137_v41, %v64_v40  ;;  %v179_v32 = vpop.permute.xlu0 %178  ;;  %v295_v38 = vpop.permute.xlu1 %294 }
  0x9d   :  { %v297_v39 = vperm.slane %v295_v38, 0 }
  0x9e   :  { %249 = vmatpush.msra.mxu1 %v159_v43  ;;  %345 = vmatpush.msra.mxu3 %v159_v43  ;;  %v155_v56 = vmax.f32 %v138_v48, 0.0 }
  0xa0   :  { %250 = vmatpush.msra.mxu1 %v158_v45  ;;  %346 = vmatpush.msra.mxu3 %v158_v45 }
  0xa2   :  { %251 = vmatpush.msra.mxu1 %v157_v46  ;;  %347 = vmatpush.msra.mxu3 %v157_v46 }
  0xa3   :  { %v140_v47 = vpop.f32.mrf.mxu0 }
  0xa4   :  { %v141_v49 = vadd.f32 %v140_v47, %v69_v44 }
  0xa6   :  { %v156_v52 = vmax.f32 %v141_v49, 0.0 }
  0xa8   :  { %252 = vmatpush.msra.mxu1 %v156_v52  ;;  %348 = vmatpush.msra.mxu3 %v156_v52 }
  0xaa   :  { %253 = vmatpush.msra.mxu1 %v155_v56  ;;  %349 = vmatpush.msra.mxu3 %v155_v56 }
  0xac   :  { %254 = vmatpush.msra.mxu1 %v154_v58  ;;  %350 = vmatpush.msra.mxu3 %v154_v58 }
  0xae   :  { %255 = vmatpush.msra.mxu1 %v153_v59  ;;  %351 = vmatpush.msra.mxu3 %v153_v59 }
  0xb0   :  { %256 = vmatpush.msra.mxu1 %v152_v60  ;;  %352 = vmatpush.msra.mxu3 %v152_v60 }
  0xb1   :  { %334 = vmatmul.msk.f32.vlgmr.msra.gmra.mxu1 %vm216_vm1, %v160_v61  ;;  %338 = vmatmul.msk.f32.vlgmr.msra.gmra.mxu3 %vm216_vm1, %v164_v62 }
  0xb9   :  { %335 = vmatmul.msk.f32.gmra.mxu1 %vm216_vm1, %v161_v63  ;;  %339 = vmatmul.msk.f32.gmra.mxu3 %vm216_vm1, %v165_v0 }
  0xc1   :  { %336 = vmatmul.msk.f32.gmra.mxu1 %vm216_vm1, %v162_v1  ;;  %340 = vmatmul.msk.f32.gmra.mxu3 %vm216_vm1, %v166_v2 }
  0xc9   :  { %337 = vmatmul.msk.f32.gmra.mxu1 %vm216_vm1, %v163_v3  ;;  %341 = vmatmul.msk.f32.gmra.mxu3 %vm216_vm1, %v167_v4 }
 0x12e   :  { %v258_v5 = vpop.f32.mrf.mxu1 }
 0x12f   :  { %v259_v33 = vadd.f32 %v258_v5, %v179_v32 }
 0x131   :  { %v282_v36 = vmax.f32 %v259_v33, 0.0 }
 0x134   :  { %v270_v6 = vpop.f32.mrf.mxu3 }
 0x135   :  { %v271_v22 = vadd.f32 %v270_v6, %v199_v14 }
 0x136   :  { %v261_v7 = vpop.f32.mrf.mxu1 }
 0x137   :  { %v286_v27 = vmax.f32 %v271_v22, 0.0  ;;  %v262_v30 = vadd.f32 %v261_v7, %v184_v29 }
 0x139   :  { %v283_v35 = vmax.f32 %v262_v30, 0.0 }
 0x13c   :  { %v273_v8 = vpop.f32.mrf.mxu3 }
 0x13d   :  { %v274_v19 = vadd.f32 %v273_v8, %v204_v13 }
 0x13e   :  { %v264_v12 = vpop.f32.mrf.mxu1 }
 0x13f   :  { %v287_v24 = vmax.f32 %v274_v19, 0.0  ;;  %v265_v28 = vadd.f32 %v264_v12, %v189_v26 }
 0x141   :  { %v284_v34 = vmax.f32 %v265_v28, 0.0 }
 0x144   :  { %v276_v11 = vpop.f32.mrf.mxu3 }
 0x145   :  { %v277_v16 = vadd.f32 %v276_v11, %v209_v10 }
 0x146   :  { %v267_v21 = vpop.f32.mrf.mxu1 }
 0x147   :  { %v288_v23 = vmax.f32 %v277_v16, 0.0  ;;  %v268_v25 = vadd.f32 %v267_v21, %v194_v18 }
 0x149   :  { %v285_v31 = vmax.f32 %v268_v25, 0.0 }
 0x14c   :  { %v279_v15 = vpop.f32.mrf.mxu3 }
 0x14d   :  { %v280_v17 = vadd.f32 %v279_v15, %v214_v9 }
 0x14f   :  { %v289_v20 = vmax.f32 %v280_v17, 0.0 }
 0x151   :  { %309 = vmatpush.msrb.mxu2 %v289_v20 }
 0x153   :  { %310 = vmatpush.msrb.mxu2 %v288_v23 }
 0x155   :  { %311 = vmatpush.msrb.mxu2 %v287_v24 }
 0x157   :  { %312 = vmatpush.msrb.mxu2 %v286_v27 }
 0x159   :  { %313 = vmatpush.msrb.mxu2 %v285_v31 }
 0x15b   :  { %314 = vmatpush.msrb.mxu2 %v284_v34 }
 0x15d   :  { %315 = vmatpush.msrb.mxu2 %v283_v35 }
 0x15f   :  { %316 = vmatpush.msrb.mxu2 %v282_v36 }
 0x160   :  { %342 = vmatmul.msk.f32.vlgmr.msrb.gmra.mxu2 %vm216_vm1, %v290_v37 }
 0x1e3   :  { %v318_v40 = vpop.f32.mrf.mxu2 }
 0x1e4   :  { %v319_v41 = vadd.f32 %v318_v40, %v297_v39 }
 0x1e6   :  { %321 = vst [vmem:[%s533_s7] sm:$0x1] %v319_v41 }

</bundles_post_ra>
